<compile_context>
chip_gen: v7x
topology: tpu7x:2x2x1
jax: 0.10.0
libtpu: 0.0.40
codegen_flags: <defaults>
</compile_context>

<pallas_src>
import math
from functools import partial

import jax
import jax.numpy as jnp
from jax.experimental import pallas as pl
from jax.experimental.pallas import tpu as pltpu

_LANE = 128
_MAX_TM = 1024                       # token-tile rows (review: 512–1024)
_VMEM_LIMIT = 48 * 1024 * 1024       # explicit scoped-VMEM cap, < v7x 64 MiB


def _round_up(x, m):
    return ((x + m - 1) // m) * m


def _pad_last(x, target):
    pad = target - x.shape[-1]
    if pad == 0:
        return x
    return jnp.pad(x, [(0, 0)] * (x.ndim - 1) + [(0, pad)])


# ----------------------------------------------------------------------------
# Pallas kernels
# ----------------------------------------------------------------------------
def _matmul_affine_kernel(p_ref, w_ref, scale_ref, shift_ref, o_ref, *, relu):
    """(TM,K)bf16 @ (K,Np)bf16 on the MXU with f32 accumulation, fused
    per-channel affine (folded frozen-BN or conv bias) and optional ReLU."""
    acc = jnp.dot(p_ref[...], w_ref[...], preferred_element_type=jnp.float32)
    out = acc * scale_ref[...] + shift_ref[...]
    if relu:
        out = jnp.maximum(out, 0.0)
    o_ref[...] = out.astype(o_ref.dtype)


def _layernorm_kernel(x_ref, g_ref, b_ref, o_ref, *, eps, c_real):
    """LayerNorm over the channel axis for a (TM, Cpad) slab.  Statistics are
    computed over the first c_real channels only (the rest is lane padding)."""
    x = x_ref[...].astype(jnp.float32)
    cpad = x.shape[-1]
    mask = jax.lax.broadcasted_iota(jnp.int32, (1, cpad), 1) < c_real
    inv_c = 1.0 / c_real
    xm = jnp.where(mask, x, 0.0)
    mean = jnp.sum(xm, axis=-1, keepdims=True) * inv_c
    cen = x - mean
    var = jnp.sum(jnp.where(mask, cen * cen, 0.0), axis=-1, keepdims=True) * inv_c
    y = cen * jax.lax.rsqrt(var + eps) * g_ref[...] + b_ref[...]
    o_ref[...] = y.astype(o_ref.dtype)


# ----------------------------------------------------------------------------
# Glue: im2col + tiled kernel launches
# ----------------------------------------------------------------------------
def _im2col(x_nhwc, kh, kw, stride, pad):
    B, H, W, C = x_nhwc.shape
    xp = jnp.pad(x_nhwc, ((0, 0), (pad, pad), (pad, pad), (0, 0)))
    Ho = (H + 2 * pad - kh) // stride + 1
    Wo = (W + 2 * pad - kw) // stride + 1
    cols = []
    for i in range(kh):
        for j in range(kw):
            cols.append(xp[:, i:i + stride * Ho:stride, j:j + stride * Wo:stride, :])
    patches = jnp.stack(cols, axis=3)                       # (B, Ho, Wo, kh*kw, C)
    return patches.reshape(B * Ho * Wo, kh * kw * C), Ho, Wo


def _conv_affine(x_nhwc, w, scale, shift, stride, pad, relu, out_dtype):
    """Conv2d(stride, pad) + per-channel affine (+ReLU).
    Weight layout (kh, kw, cin, cout).  Output channels are padded to a
    multiple of 128 (lane-dense stores); the input activation may already
    carry such padding — only the first `cin` channels are consumed."""
    kh, kw, cin, cout = w.shape
    x_real = x_nhwc[..., :cin].astype(jnp.bfloat16)
    patches, Ho, Wo = _im2col(x_real, kh, kw, stride, pad)  # bf16 (M, K)
    M, K = patches.shape

    coutp = _round_up(cout, _LANE)
    w2 = _pad_last(w.reshape(kh * kw * cin, cout), coutp).astype(jnp.bfloat16)
    scale_p = _pad_last(scale.reshape(1, cout).astype(jnp.float32), coutp)
    shift_p = _pad_last(shift.reshape(1, cout).astype(jnp.float32), coutp)

    TM = min(_MAX_TM, _round_up(M, 8))
    grid = (pl.cdiv(M, TM),)

    out = pl.pallas_call(
        partial(_matmul_affine_kernel, relu=relu),
        out_shape=jax.ShapeDtypeStruct((M, coutp), out_dtype),
        grid=grid,
        in_specs=[
            pl.BlockSpec((TM, K), lambda i: (i, 0)),        # patches: tiled over M
            pl.BlockSpec((K, coutp), lambda i: (0, 0)),     # weight: resident
            pl.BlockSpec((1, coutp), lambda i: (0, 0)),     # scale:  resident
            pl.BlockSpec((1, coutp), lambda i: (0, 0)),     # shift:  resident
        ],
        out_specs=pl.BlockSpec((TM, coutp), lambda i: (i, 0)),
        compiler_params=pltpu.CompilerParams(
            dimension_semantics=("parallel",),
            vmem_limit_bytes=_VMEM_LIMIT),
    )(patches, w2, scale_p, shift_p)

    B = x_nhwc.shape[0]
    return out.reshape(B, Ho, Wo, coutp), Ho, Wo


def _layernorm(tokens_padded, gamma, beta, c_real, eps=1e-5):
    M, Cp = tokens_padded.shape
    g = _pad_last(gamma.reshape(1, -1).astype(jnp.float32), Cp)
    b = _pad_last(beta.reshape(1, -1).astype(jnp.float32), Cp)
    TM = min(_MAX_TM, _round_up(M, 8))
    return pl.pallas_call(
        partial(_layernorm_kernel, eps=eps, c_real=c_real),
        out_shape=jax.ShapeDtypeStruct((M, Cp), jnp.float32),
        grid=(pl.cdiv(M, TM),),
        in_specs=[
            pl.BlockSpec((TM, Cp), lambda i: (i, 0)),       # tokens: tiled
            pl.BlockSpec((1, Cp), lambda i: (0, 0)),        # gamma: resident
            pl.BlockSpec((1, Cp), lambda i: (0, 0)),        # beta:  resident
        ],
        out_specs=pl.BlockSpec((TM, Cp), lambda i: (i, 0)),
        compiler_params=pltpu.CompilerParams(
            dimension_semantics=("parallel",),
            vmem_limit_bytes=_VMEM_LIMIT),
    )(tokens_padded, g, b)


# ----------------------------------------------------------------------------
# Parameter initialization (mirrors Stem._init_weights, deterministic)
# ----------------------------------------------------------------------------
def _conv_weight(key, kh, kw, cin, cout):
    fan_out = kh * kw * cout   # groups == 1
    std = math.sqrt(2.0 / fan_out)
    return std * jax.random.normal(key, (kh, kw, cin, cout), dtype=jnp.float32)


def _folded_bn(c, eps=1e-5):
    # Frozen BN at PyTorch init: gamma=1, beta=0, running_mean=0, running_var=1.
    gamma = jnp.ones((c,), jnp.float32)
    beta = jnp.zeros((c,), jnp.float32)
    mean = jnp.zeros((c,), jnp.float32)
    var = jnp.ones((c,), jnp.float32)
    scale = gamma / jnp.sqrt(var + eps)
    shift = beta - mean * scale
    return scale, shift


def init_stem_params(key, in_channels, stem_hidden_dim, out_channels):
    h = stem_hidden_dim
    k1, k2, k3, k4 = jax.random.split(key, 4)
    p = {}
    p["w1"] = _conv_weight(k1, 7, 7, in_channels, h)
    p["bn1_scale"], p["bn1_shift"] = _folded_bn(h)
    p["w2"] = _conv_weight(k2, 3, 3, h, h)
    p["bn2_scale"], p["bn2_shift"] = _folded_bn(h)
    p["w3"] = _conv_weight(k3, 3, 3, h, h)
    p["bn3_scale"], p["bn3_shift"] = _folded_bn(h)
    p["wp"] = _conv_weight(k4, 3, 3, h, out_channels)
    p["bp"] = jnp.zeros((out_channels,), jnp.float32)          # proj bias
    p["ln_g"] = jnp.ones((out_channels,), jnp.float32)          # LayerNorm weight
    p["ln_b"] = jnp.zeros((out_channels,), jnp.float32)         # LayerNorm bias
    return p


# ----------------------------------------------------------------------------
# Forward pass (matches Stem.forward)
# ----------------------------------------------------------------------------
def stem_forward(x_nchw, params):
    # NCHW -> NHWC, inter-stage activations kept in bf16.
    x = jnp.transpose(x_nchw, (0, 2, 3, 1)).astype(jnp.bfloat16)

    # conv 7x7 s2 p3 -> frozen BN -> ReLU
    x, _, _ = _conv_affine(x, params["w1"], params["bn1_scale"], params["bn1_shift"],
                           stride=2, pad=3, relu=True, out_dtype=jnp.bfloat16)
    # conv 3x3 s1 p1 -> frozen BN -> ReLU
    x, _, _ = _conv_affine(x, params["w2"], params["bn2_scale"], params["bn2_shift"],
                           stride=1, pad=1, relu=True, out_dtype=jnp.bfloat16)
    # conv 3x3 s1 p1 -> frozen BN -> ReLU
    x, _, _ = _conv_affine(x, params["w3"], params["bn3_scale"], params["bn3_shift"],
                           stride=1, pad=1, relu=True, out_dtype=jnp.bfloat16)
    # proj: conv 3x3 s2 p1 with bias, no ReLU (keep f32 into the LayerNorm)
    cout = params["wp"].shape[-1]
    x, H, W = _conv_affine(x, params["wp"], jnp.ones((cout,), jnp.float32), params["bp"],
                           stride=2, pad=1, relu=False, out_dtype=jnp.float32)

    # flatten(2).transpose(1,2): NHWC reshape gives the same row-major (H*W)
    # token order as NCHW flatten+transpose.
    B, Cp = x.shape[0], x.shape[-1]
    tokens = x.reshape(B * H * W, Cp)
    tokens = _layernorm(tokens, params["ln_g"], params["ln_b"], c_real=cout)
    out = tokens.reshape(B, H * W, Cp)[:, :, :cout]   # drop lane padding
    return out, H, W


# ----------------------------------------------------------------------------
if __name__ == "__main__":
    key = jax.random.PRNGKey(0)
    kx, kp = jax.random.split(key)

    in_channels, stem_hidden_dim, out_channels = 4, 16, 32
    x = jax.random.normal(kx, (2, in_channels, 16, 16), dtype=jnp.float32)  # NCHW

    params = init_stem_params(kp, in_channels, stem_hidden_dim, out_channels)

    fwd = jax.jit(stem_forward)
    out, H, W = fwd(x, params)
    out = jax.block_until_ready(out)
    H, W = int(H), int(W)

    assert out.shape == (2, H * W, out_channels), out.shape
    assert (H, W) == (4, 4), (H, W)
    assert bool(jnp.all(jnp.isfinite(out)))
    print("KERNEL_OK")
</pallas_src>

<mosaic_0001>
module attributes {stable_mosaic.version = 11 : i64} {
  func.func @_matmul_affine_kernel(%arg0: i32, %arg1: memref<128x196xbf16, #tpu.memory_space<vmem>>, %arg2: memref<196x128xbf16, #tpu.memory_space<vmem>>, %arg3: memref<1x128xf32, #tpu.memory_space<vmem>>, %arg4: memref<1x128xf32, #tpu.memory_space<vmem>>, %arg5: memref<128x128xbf16, #tpu.memory_space<vmem>>) attributes {dimension_semantics = [#tpu.dimension_semantics<parallel>], iteration_bounds = array<i64: 1>, scalar_prefetch = 0 : i64, scratch_operands = 0 : i64, tpu.core_type = #tpu.core_type<tc>, window_params = [{transform_indices = @transform_0, window_bounds = array<i64: 128, 196>}, {pipeline_mode = #tpu.pipeline_mode<synchronous>, transform_indices = @transform_1, window_bounds = array<i64: 196, 128>}, {pipeline_mode = #tpu.pipeline_mode<synchronous>, transform_indices = @transform_2, window_bounds = array<i64: 1, 128>}, {pipeline_mode = #tpu.pipeline_mode<synchronous>, transform_indices = @transform_3, window_bounds = array<i64: 1, 128>}, {transform_indices = @transform_4, window_bounds = array<i64: 128, 128>}]} {
    %c0 = arith.constant 0 : index
    %c0_0 = arith.constant 0 : index
    %0 = vector.load %arg1[%c0, %c0_0] : memref<128x196xbf16, #tpu.memory_space<vmem>>, vector<128x196xbf16>
    %c0_1 = arith.constant 0 : index
    %c0_2 = arith.constant 0 : index
    %1 = vector.load %arg2[%c0_1, %c0_2] : memref<196x128xbf16, #tpu.memory_space<vmem>>, vector<196x128xbf16>
    %cst = arith.constant dense<0.000000e+00> : vector<128x128xf32>
    %2 = tpu.matmul %0, %1, %cst {dimension_numbers = #tpu.dot_dimension_numbers<[1], [0], [0], [1], [0, 0, 1, 1], [], []>} : vector<128x196xbf16>, vector<196x128xbf16>, vector<128x128xf32> -> vector<128x128xf32>
    %c0_3 = arith.constant 0 : index
    %c0_4 = arith.constant 0 : index
    %3 = vector.load %arg3[%c0_3, %c0_4] : memref<1x128xf32, #tpu.memory_space<vmem>>, vector<1x128xf32>
    %4 = vector.broadcast %3 : vector<1x128xf32> to vector<128x128xf32>
    %5 = arith.mulf %2, %4 : vector<128x128xf32>
    %c0_5 = arith.constant 0 : index
    %c0_6 = arith.constant 0 : index
    %6 = vector.load %arg4[%c0_5, %c0_6] : memref<1x128xf32, #tpu.memory_space<vmem>>, vector<1x128xf32>
    %7 = vector.broadcast %6 : vector<1x128xf32> to vector<128x128xf32>
    %8 = arith.addf %5, %7 : vector<128x128xf32>
    %cst_7 = arith.constant 0.000000e+00 : f32
    %9 = vector.broadcast %cst_7 : f32 to vector<128x128xf32>
    %10 = arith.maximumf %8, %9 : vector<128x128xf32>
    %11 = arith.truncf %10 : vector<128x128xf32> to vector<128x128xbf16>
    %c0_8 = arith.constant 0 : index
    %c0_9 = arith.constant 0 : index
    %12 = vector.load %arg5[%c0_8, %c0_9] : memref<128x128xbf16, #tpu.memory_space<vmem>>, vector<128x128xbf16>
    tpu.vector_store %arg5[%c0_8, %c0_9], %11 {strides = array<i32>} : memref<128x128xbf16, #tpu.memory_space<vmem>>, vector<128x128xbf16>,
    return
  }
  func.func @transform_0(%arg0: i32) -> (i32, i32) {
    %c0_i32 = arith.constant 0 : i32
    %c0_i32_0 = arith.constant 0 : i32
    return %arg0, %c0_i32 : i32, i32
  }
  func.func @transform_1(%arg0: i32) -> (i32, i32) {
    %c0_i32 = arith.constant 0 : i32
    %c0_i32_0 = arith.constant 0 : i32
    %c0_i32_1 = arith.constant 0 : i32
    return %c0_i32, %c0_i32_0 : i32, i32
  }
  func.func @transform_2(%arg0: i32) -> (i32, i32) {
    %c0_i32 = arith.constant 0 : i32
    %c0_i32_0 = arith.constant 0 : i32
    %c0_i32_1 = arith.constant 0 : i32
    return %c0_i32, %c0_i32_0 : i32, i32
  }
  func.func @transform_3(%arg0: i32) -> (i32, i32) {
    %c0_i32 = arith.constant 0 : i32
    %c0_i32_0 = arith.constant 0 : i32
    %c0_i32_1 = arith.constant 0 : i32
    return %c0_i32, %c0_i32_0 : i32, i32
  }
  func.func @transform_4(%arg0: i32) -> (i32, i32) {
    %c0_i32 = arith.constant 0 : i32
    %c0_i32_0 = arith.constant 0 : i32
    return %arg0, %c0_i32 : i32, i32
  }
}

module attributes {stable_mosaic.version = 11 : i64} {
  func.func @_matmul_affine_kernel(%arg0: i32, %arg1: memref<128x144xbf16, #tpu.memory_space<vmem>>, %arg2: memref<144x128xbf16, #tpu.memory_space<vmem>>, %arg3: memref<1x128xf32, #tpu.memory_space<vmem>>, %arg4: memref<1x128xf32, #tpu.memory_space<vmem>>, %arg5: memref<128x128xbf16, #tpu.memory_space<vmem>>) attributes {dimension_semantics = [#tpu.dimension_semantics<parallel>], iteration_bounds = array<i64: 1>, scalar_prefetch = 0 : i64, scratch_operands = 0 : i64, tpu.core_type = #tpu.core_type<tc>, window_params = [{transform_indices = @transform_0, window_bounds = array<i64: 128, 144>}, {pipeline_mode = #tpu.pipeline_mode<synchronous>, transform_indices = @transform_1, window_bounds = array<i64: 144, 128>}, {pipeline_mode = #tpu.pipeline_mode<synchronous>, transform_indices = @transform_2, window_bounds = array<i64: 1, 128>}, {pipeline_mode = #tpu.pipeline_mode<synchronous>, transform_indices = @transform_3, window_bounds = array<i64: 1, 128>}, {transform_indices = @transform_4, window_bounds = array<i64: 128, 128>}]} {
    %c0 = arith.constant 0 : index
    %c0_0 = arith.constant 0 : index
    %0 = vector.load %arg1[%c0, %c0_0] : memref<128x144xbf16, #tpu.memory_space<vmem>>, vector<128x144xbf16>
    %c0_1 = arith.constant 0 : index
    %c0_2 = arith.constant 0 : index
    %1 = vector.load %arg2[%c0_1, %c0_2] : memref<144x128xbf16, #tpu.memory_space<vmem>>, vector<144x128xbf16>
    %cst = arith.constant dense<0.000000e+00> : vector<128x128xf32>
    %2 = tpu.matmul %0, %1, %cst {dimension_numbers = #tpu.dot_dimension_numbers<[1], [0], [0], [1], [0, 0, 1, 1], [], []>} : vector<128x144xbf16>, vector<144x128xbf16>, vector<128x128xf32> -> vector<128x128xf32>
    %c0_3 = arith.constant 0 : index
    %c0_4 = arith.constant 0 : index
    %3 = vector.load %arg3[%c0_3, %c0_4] : memref<1x128xf32, #tpu.memory_space<vmem>>, vector<1x128xf32>
    %4 = vector.broadcast %3 : vector<1x128xf32> to vector<128x128xf32>
    %5 = arith.mulf %2, %4 : vector<128x128xf32>
    %c0_5 = arith.constant 0 : index
    %c0_6 = arith.constant 0 : index
    %6 = vector.load %arg4[%c0_5, %c0_6] : memref<1x128xf32, #tpu.memory_space<vmem>>, vector<1x128xf32>
    %7 = vector.broadcast %6 : vector<1x128xf32> to vector<128x128xf32>
    %8 = arith.addf %5, %7 : vector<128x128xf32>
    %cst_7 = arith.constant 0.000000e+00 : f32
    %9 = vector.broadcast %cst_7 : f32 to vector<128x128xf32>
    %10 = arith.maximumf %8, %9 : vector<128x128xf32>
    %11 = arith.truncf %10 : vector<128x128xf32> to vector<128x128xbf16>
    %c0_8 = arith.constant 0 : index
    %c0_9 = arith.constant 0 : index
    %12 = vector.load %arg5[%c0_8, %c0_9] : memref<128x128xbf16, #tpu.memory_space<vmem>>, vector<128x128xbf16>
    tpu.vector_store %arg5[%c0_8, %c0_9], %11 {strides = array<i32>} : memref<128x128xbf16, #tpu.memory_space<vmem>>, vector<128x128xbf16>,
    return
  }
  func.func @transform_0(%arg0: i32) -> (i32, i32) {
    %c0_i32 = arith.constant 0 : i32
    %c0_i32_0 = arith.constant 0 : i32
    return %arg0, %c0_i32 : i32, i32
  }
  func.func @transform_1(%arg0: i32) -> (i32, i32) {
    %c0_i32 = arith.constant 0 : i32
    %c0_i32_0 = arith.constant 0 : i32
    %c0_i32_1 = arith.constant 0 : i32
    return %c0_i32, %c0_i32_0 : i32, i32
  }
  func.func @transform_2(%arg0: i32) -> (i32, i32) {
    %c0_i32 = arith.constant 0 : i32
    %c0_i32_0 = arith.constant 0 : i32
    %c0_i32_1 = arith.constant 0 : i32
    return %c0_i32, %c0_i32_0 : i32, i32
  }
  func.func @transform_3(%arg0: i32) -> (i32, i32) {
    %c0_i32 = arith.constant 0 : i32
    %c0_i32_0 = arith.constant 0 : i32
    %c0_i32_1 = arith.constant 0 : i32
    return %c0_i32, %c0_i32_0 : i32, i32
  }
  func.func @transform_4(%arg0: i32) -> (i32, i32) {
    %c0_i32 = arith.constant 0 : i32
    %c0_i32_0 = arith.constant 0 : i32
    return %arg0, %c0_i32 : i32, i32
  }
}

module attributes {stable_mosaic.version = 11 : i64} {
  func.func @_matmul_affine_kernel(%arg0: i32, %arg1: memref<32x144xbf16, #tpu.memory_space<vmem>>, %arg2: memref<144x128xbf16, #tpu.memory_space<vmem>>, %arg3: memref<1x128xf32, #tpu.memory_space<vmem>>, %arg4: memref<1x128xf32, #tpu.memory_space<vmem>>, %arg5: memref<32x128xf32, #tpu.memory_space<vmem>>) attributes {dimension_semantics = [#tpu.dimension_semantics<parallel>], iteration_bounds = array<i64: 1>, scalar_prefetch = 0 : i64, scratch_operands = 0 : i64, tpu.core_type = #tpu.core_type<tc>, window_params = [{transform_indices = @transform_0, window_bounds = array<i64: 32, 144>}, {pipeline_mode = #tpu.pipeline_mode<synchronous>, transform_indices = @transform_1, window_bounds = array<i64: 144, 128>}, {pipeline_mode = #tpu.pipeline_mode<synchronous>, transform_indices = @transform_2, window_bounds = array<i64: 1, 128>}, {pipeline_mode = #tpu.pipeline_mode<synchronous>, transform_indices = @transform_3, window_bounds = array<i64: 1, 128>}, {transform_indices = @transform_4, window_bounds = array<i64: 32, 128>}]} {
    %c0 = arith.constant 0 : index
    %c0_0 = arith.constant 0 : index
    %0 = vector.load %arg1[%c0, %c0_0] : memref<32x144xbf16, #tpu.memory_space<vmem>>, vector<32x144xbf16>
    %c0_1 = arith.constant 0 : index
    %c0_2 = arith.constant 0 : index
    %1 = vector.load %arg2[%c0_1, %c0_2] : memref<144x128xbf16, #tpu.memory_space<vmem>>, vector<144x128xbf16>
    %cst = arith.constant dense<0.000000e+00> : vector<32x128xf32>
    %2 = tpu.matmul %0, %1, %cst {dimension_numbers = #tpu.dot_dimension_numbers<[1], [0], [0], [1], [0, 0, 1, 1], [], []>} : vector<32x144xbf16>, vector<144x128xbf16>, vector<32x128xf32> -> vector<32x128xf32>
    %c0_3 = arith.constant 0 : index
    %c0_4 = arith.constant 0 : index
    %3 = vector.load %arg3[%c0_3, %c0_4] : memref<1x128xf32, #tpu.memory_space<vmem>>, vector<1x128xf32>
    %4 = vector.broadcast %3 : vector<1x128xf32> to vector<32x128xf32>
    %5 = arith.mulf %2, %4 : vector<32x128xf32>
    %c0_5 = arith.constant 0 : index
    %c0_6 = arith.constant 0 : index
    %6 = vector.load %arg4[%c0_5, %c0_6] : memref<1x128xf32, #tpu.memory_space<vmem>>, vector<1x128xf32>
    %7 = vector.broadcast %6 : vector<1x128xf32> to vector<32x128xf32>
    %8 = arith.addf %5, %7 : vector<32x128xf32>
    %c0_7 = arith.constant 0 : index
    %c0_8 = arith.constant 0 : index
    %9 = vector.load %arg5[%c0_7, %c0_8] : memref<32x128xf32, #tpu.memory_space<vmem>>, vector<32x128xf32>
    tpu.vector_store %arg5[%c0_7, %c0_8], %8 {strides = array<i32>} : memref<32x128xf32, #tpu.memory_space<vmem>>, vector<32x128xf32>,
    return
  }
  func.func @transform_0(%arg0: i32) -> (i32, i32) {
    %c0_i32 = arith.constant 0 : i32
    %c0_i32_0 = arith.constant 0 : i32
    return %arg0, %c0_i32 : i32, i32
  }
  func.func @transform_1(%arg0: i32) -> (i32, i32) {
    %c0_i32 = arith.constant 0 : i32
    %c0_i32_0 = arith.constant 0 : i32
    %c0_i32_1 = arith.constant 0 : i32
    return %c0_i32, %c0_i32_0 : i32, i32
  }
  func.func @transform_2(%arg0: i32) -> (i32, i32) {
    %c0_i32 = arith.constant 0 : i32
    %c0_i32_0 = arith.constant 0 : i32
    %c0_i32_1 = arith.constant 0 : i32
    return %c0_i32, %c0_i32_0 : i32, i32
  }
  func.func @transform_3(%arg0: i32) -> (i32, i32) {
    %c0_i32 = arith.constant 0 : i32
    %c0_i32_0 = arith.constant 0 : i32
    %c0_i32_1 = arith.constant 0 : i32
    return %c0_i32, %c0_i32_0 : i32, i32
  }
  func.func @transform_4(%arg0: i32) -> (i32, i32) {
    %c0_i32 = arith.constant 0 : i32
    %c0_i32_0 = arith.constant 0 : i32
    return %arg0, %c0_i32 : i32, i32
  }
}

module attributes {stable_mosaic.version = 11 : i64} {
  func.func @_layernorm_kernel(%arg0: i32, %arg1: memref<32x128xf32, #tpu.memory_space<vmem>>, %arg2: memref<1x128xf32, #tpu.memory_space<vmem>>, %arg3: memref<1x128xf32, #tpu.memory_space<vmem>>, %arg4: memref<32x128xf32, #tpu.memory_space<vmem>>) attributes {dimension_semantics = [#tpu.dimension_semantics<parallel>], iteration_bounds = array<i64: 1>, scalar_prefetch = 0 : i64, scratch_operands = 0 : i64, tpu.core_type = #tpu.core_type<tc>, window_params = [{transform_indices = @transform_0, window_bounds = array<i64: 32, 128>}, {pipeline_mode = #tpu.pipeline_mode<synchronous>, transform_indices = @transform_1, window_bounds = array<i64: 1, 128>}, {pipeline_mode = #tpu.pipeline_mode<synchronous>, transform_indices = @transform_2, window_bounds = array<i64: 1, 128>}, {transform_indices = @transform_3, window_bounds = array<i64: 32, 128>}]} {
    %c0 = arith.constant 0 : index
    %c0_0 = arith.constant 0 : index
    %0 = vector.load %arg1[%c0, %c0_0] : memref<32x128xf32, #tpu.memory_space<vmem>>, vector<32x128xf32>
    %1 = tpu.iota {dimensions = array<i32: 1>} : vector<1x128xi32>
    %c32_i32 = arith.constant 32 : i32
    %2 = vector.broadcast %c32_i32 : i32 to vector<1x128xi32>
    %3 = arith.cmpi slt, %1, %2 : vector<1x128xi32>
    %cst = arith.constant 0.000000e+00 : f32
    %4 = vector.shape_cast %3 : vector<1x128xi1> to vector<1x128xi1>
    %5 = vector.broadcast %4 : vector<1x128xi1> to vector<32x128xi1>
    %6 = vector.broadcast %cst : f32 to vector<32x128xf32>
    %7 = arith.select %5, %0, %6 : vector<32x128xi1>, vector<32x128xf32>
    %cst_1 = arith.constant dense<0.000000e+00> : vector<32xf32>
    %8 = vector.multi_reduction <add>, %7, %cst_1 [1] : vector<32x128xf32> to vector<32xf32>
    %9 = vector.shape_cast %8 : vector<32xf32> to vector<32x1xf32>
    %cst_2 = arith.constant 3.125000e-02 : f32
    %10 = vector.broadcast %cst_2 : f32 to vector<32x1xf32>
    %11 = arith.mulf %9, %10 : vector<32x1xf32>
    %12 = vector.broadcast %11 : vector<32x1xf32> to vector<32x128xf32>
    %13 = arith.subf %0, %12 : vector<32x128xf32>
    %14 = arith.mulf %13, %13 : vector<32x128xf32>
    %cst_3 = arith.constant 0.000000e+00 : f32
    %15 = vector.shape_cast %3 : vector<1x128xi1> to vector<1x128xi1>
    %16 = vector.broadcast %15 : vector<1x128xi1> to vector<32x128xi1>
    %17 = vector.broadcast %cst_3 : f32 to vector<32x128xf32>
    %18 = arith.select %16, %14, %17 : vector<32x128xi1>, vector<32x128xf32>
    %cst_4 = arith.constant dense<0.000000e+00> : vector<32xf32>
    %19 = vector.multi_reduction <add>, %18, %cst_4 [1] : vector<32x128xf32> to vector<32xf32>
    %20 = vector.shape_cast %19 : vector<32xf32> to vector<32x1xf32>
    %cst_5 = arith.constant 3.125000e-02 : f32
    %21 = vector.broadcast %cst_5 : f32 to vector<32x1xf32>
    %22 = arith.mulf %20, %21 : vector<32x1xf32>
    %cst_6 = arith.constant 9.99999974E-6 : f32
    %23 = vector.broadcast %cst_6 : f32 to vector<32x1xf32>
    %24 = arith.addf %22, %23 : vector<32x1xf32>
    %25 = math.rsqrt %24 : vector<32x1xf32>
    %26 = vector.broadcast %25 : vector<32x1xf32> to vector<32x128xf32>
    %27 = arith.mulf %13, %26 : vector<32x128xf32>
    %c0_7 = arith.constant 0 : index
    %c0_8 = arith.constant 0 : index
    %28 = vector.load %arg2[%c0_7, %c0_8] : memref<1x128xf32, #tpu.memory_space<vmem>>, vector<1x128xf32>
    %29 = vector.broadcast %28 : vector<1x128xf32> to vector<32x128xf32>
    %30 = arith.mulf %27, %29 : vector<32x128xf32>
    %c0_9 = arith.constant 0 : index
    %c0_10 = arith.constant 0 : index
    %31 = vector.load %arg3[%c0_9, %c0_10] : memref<1x128xf32, #tpu.memory_space<vmem>>, vector<1x128xf32>
    %32 = vector.broadcast %31 : vector<1x128xf32> to vector<32x128xf32>
    %33 = arith.addf %30, %32 : vector<32x128xf32>
    %c0_11 = arith.constant 0 : index
    %c0_12 = arith.constant 0 : index
    %34 = vector.load %arg4[%c0_11, %c0_12] : memref<32x128xf32, #tpu.memory_space<vmem>>, vector<32x128xf32>
    tpu.vector_store %arg4[%c0_11, %c0_12], %33 {strides = array<i32>} : memref<32x128xf32, #tpu.memory_space<vmem>>, vector<32x128xf32>,
    return
  }
  func.func @transform_0(%arg0: i32) -> (i32, i32) {
    %c0_i32 = arith.constant 0 : i32
    %c0_i32_0 = arith.constant 0 : i32
    return %arg0, %c0_i32 : i32, i32
  }
  func.func @transform_1(%arg0: i32) -> (i32, i32) {
    %c0_i32 = arith.constant 0 : i32
    %c0_i32_0 = arith.constant 0 : i32
    %c0_i32_1 = arith.constant 0 : i32
    return %c0_i32, %c0_i32_0 : i32, i32
  }
  func.func @transform_2(%arg0: i32) -> (i32, i32) {
    %c0_i32 = arith.constant 0 : i32
    %c0_i32_0 = arith.constant 0 : i32
    %c0_i32_1 = arith.constant 0 : i32
    return %c0_i32, %c0_i32_0 : i32, i32
  }
  func.func @transform_3(%arg0: i32) -> (i32, i32) {
    %c0_i32 = arith.constant 0 : i32
    %c0_i32_0 = arith.constant 0 : i32
    return %arg0, %c0_i32 : i32, i32
  }
}

</mosaic_0001>

<bundles_post_ra>
// kernel: stem_forward.5
= control target key start
LH: loop header
LB: loop body
LE: loop exit
PB: predicated region body
PF: predicated region fallthrough
CT: control target
= control target key end

     0   :  { %v660_v0 = vmov 0   ;;  %vm206_vm0 = vcmask 556032   ;;  %vm231_vm1 = vcmask 1041408   ;;  %s873_s1 = inlined_call_operand.vmem [shape: bf16[196,128], index: 1, kind: input, shape index: {}]   ;;  %s874_s0 = inlined_call_operand.vmem [shape: bf16[128,196], index: 0, kind: input, shape index: {}]   ;;  %s875_s2 = inlined_call_operand.vmem [shape: f32[1,128], index: 2, kind: input, shape index: {}]   ;;  %s876_s3 = inlined_call_operand.vmem [shape: f32[1,128], index: 3, kind: input, shape index: {}]   ;;  %s877_s4 = inlined_call_operand.vmem [shape: bf16[128,128], index: 4, kind: output, shape index: {}]  }
   0x1   :  { %235 = vmatprep.subr.bf16.mxu0 %v660_v0  ;;  %596 = vmatprep.subr.bf16.mxu1 %v660_v0  ;;  %v623_v1 = vld [vmem:[%s873_s1] sm:$0xff]   ;;  %v624_v2 = vld [vmem:[%s873_s1 + $0x8] sm:$0xff]   ;;  %v625_v3 = vld [vmem:[%s873_s1 + $0x10] sm:$0xff]  }
   0x2   :  { %236 = vmatpush1.bf16.msra.mxu0 %v623_v1  ;;  %609 = vmatpush1.bf16.msra.mxu1 %v623_v1  ;;  %v626_v4 = vld [vmem:[%s873_s1 + $0x18] sm:$0xff]   ;;  %v638_v5 = vld [vmem:[%s874_s0 + $0x4] ss:$8 sps:$4 sm:$0xff]   ;;  %v629_v9 = vld [vmem:[%s873_s1 + $0x30] sm:$0xff]  }
   0x3   :  { %237 = vmatprep.subr.bf16.mxu0 %v660_v0  ;;  %597 = vmatprep.subr.bf16.mxu1 %v660_v0  ;;  %v627_v6 = vld [vmem:[%s873_s1 + $0x20] sm:$0xff]   ;;  %v628_v8 = vld [vmem:[%s873_s1 + $0x28] sm:$0xff]   ;;  %v630_v10 = vld [vmem:[%s873_s1 + $0x38] sm:$0xff]  }
   0x4   :  { %v641_v7 = vld [vmem:[%s874_s0 + $0x44] ss:$8 sps:$4 sm:$0xff]   ;;  %507 = vmatprep.mubr.msk.bf16.mxu0 %vm206_vm0, %v638_v5  ;;  %v633_v13 = vld [vmem:[%s873_s1 + $0x50] sm:$0xff]   ;;  %v634_v14 = vld [vmem:[%s873_s1 + $0x58] sm:$0xff]  }
   0x5   :  { %511 = vmatprep.mubr.msk.bf16.mxu1 %vm206_vm0, %v641_v7  ;;  %v631_v11 = vld [vmem:[%s873_s1 + $0x40] sm:$0xff]   ;;  %v632_v12 = vld [vmem:[%s873_s1 + $0x48] sm:$0xff]   ;;  %v642_v19 = vld [vmem:[%s874_s0 + $0x14] ss:$8 sps:$4 sm:$0xff]  }
   0x6   :  { %238 = vmatpush1.bf16.msra.mxu0 %v624_v2  ;;  %610 = vmatpush1.bf16.msra.mxu1 %v624_v2  ;;  %v635_v15 = vld [vmem:[%s873_s1 + $0x60] ss:$0 sps:$4 sm:$0x33]   ;;  %v644_v20 = vld [vmem:[%s874_s0 + $0x54] ss:$8 sps:$4 sm:$0xff]  }
   0x7   :  { %239 = vmatprep.subr.bf16.mxu0 %v660_v0  ;;  %598 = vmatprep.subr.bf16.mxu1 %v660_v0  ;;  %v233_v16 = vsel %vm231_vm1, %v635_v15, 0  ;;  %v636_v17 = vld [vmem:[%s874_s0] ss:$8 sps:$4 sm:$0xff]   ;;  %v646_v21 = vld [vmem:[%s874_s0 + $0x10] ss:$8 sps:$4 sm:$0xff]  }
   0x8   :  { %v639_v18 = vld [vmem:[%s874_s0 + $0x40] ss:$8 sps:$4 sm:$0xff]   ;;  %v647_v22 = vld [vmem:[%s874_s0 + $0x50] ss:$8 sps:$4 sm:$0xff]   ;;  %v648_v23 = vld [vmem:[%s874_s0 + $0x24] ss:$8 sps:$4 sm:$0xff]  }
   0x9   :  { %v650_v24 = vld [vmem:[%s874_s0 + $0x64] ss:$8 sps:$4 sm:$0xff]   ;;  %v652_v25 = vld [vmem:[%s874_s0 + $0x20] ss:$8 sps:$4 sm:$0xff]   ;;  %v654_v27 = vld [vmem:[%s874_s0 + $0x34] ss:$8 sps:$4 sm:$0xff]  }
   0xa   :  { %240 = vmatpush1.bf16.msra.mxu0 %v625_v3  ;;  %611 = vmatpush1.bf16.msra.mxu1 %v625_v3  ;;  %v653_v26 = vld [vmem:[%s874_s0 + $0x60] ss:$8 sps:$4 sm:$0xff]   ;;  %v656_v28 = vld [vmem:[%s874_s0 + $0x74] ss:$8 sps:$4 sm:$0xff]   ;;  %v658_v29 = vld [vmem:[%s874_s0 + $0x30] ss:$8 sps:$4 sm:$0xff]  }
   0xb   :  { %241 = vmatprep.subr.bf16.mxu0 %v660_v0  ;;  %599 = vmatprep.subr.bf16.mxu1 %v660_v0  ;;  %v659_v30 = vld [vmem:[%s874_s0 + $0x70] ss:$8 sps:$4 sm:$0xff]   ;;  %v810_v31 = vld [vmem:[%s875_s2] ss:$0 sm:$0xff] }
   0xc   :  { %v815_v33 = vld [vmem:[%s876_s3] ss:$0 sm:$0xff] }
   0xe   :  { %242 = vmatpush1.bf16.msra.mxu0 %v626_v4  ;;  %612 = vmatpush1.bf16.msra.mxu1 %v626_v4 }
   0xf   :  { %243 = vmatprep.subr.bf16.mxu0 %v660_v0  ;;  %600 = vmatprep.subr.bf16.mxu1 %v660_v0 }
  0x12   :  { %244 = vmatpush1.bf16.msra.mxu0 %v627_v6  ;;  %613 = vmatpush1.bf16.msra.mxu1 %v627_v6 }
  0x13   :  { %245 = vmatprep.subr.bf16.mxu0 %v660_v0  ;;  %601 = vmatprep.subr.bf16.mxu1 %v660_v0 }
  0x16   :  { %246 = vmatpush1.bf16.msra.mxu0 %v628_v8  ;;  %614 = vmatpush1.bf16.msra.mxu1 %v628_v8 }
  0x17   :  { %247 = vmatprep.subr.bf16.mxu0 %v660_v0  ;;  %602 = vmatprep.subr.bf16.mxu1 %v660_v0 }
  0x1a   :  { %248 = vmatpush1.bf16.msra.mxu0 %v629_v9  ;;  %615 = vmatpush1.bf16.msra.mxu1 %v629_v9 }
  0x1b   :  { %249 = vmatprep.subr.bf16.mxu0 %v660_v0  ;;  %603 = vmatprep.subr.bf16.mxu1 %v660_v0 }
  0x1e   :  { %250 = vmatpush1.bf16.msra.mxu0 %v630_v10  ;;  %616 = vmatpush1.bf16.msra.mxu1 %v630_v10 }
  0x1f   :  { %251 = vmatprep.subr.bf16.mxu0 %v660_v0  ;;  %604 = vmatprep.subr.bf16.mxu1 %v660_v0 }
  0x22   :  { %252 = vmatpush1.bf16.msra.mxu0 %v631_v11  ;;  %617 = vmatpush1.bf16.msra.mxu1 %v631_v11 }
  0x23   :  { %253 = vmatprep.subr.bf16.mxu0 %v660_v0  ;;  %605 = vmatprep.subr.bf16.mxu1 %v660_v0 }
  0x26   :  { %254 = vmatpush1.bf16.msra.mxu0 %v632_v12  ;;  %618 = vmatpush1.bf16.msra.mxu1 %v632_v12 }
  0x27   :  { %255 = vmatprep.subr.bf16.mxu0 %v660_v0  ;;  %606 = vmatprep.subr.bf16.mxu1 %v660_v0 }
  0x2a   :  { %256 = vmatpush1.bf16.msra.mxu0 %v633_v13  ;;  %619 = vmatpush1.bf16.msra.mxu1 %v633_v13 }
  0x2b   :  { %257 = vmatprep.subr.bf16.mxu0 %v660_v0  ;;  %607 = vmatprep.subr.bf16.mxu1 %v660_v0 }
  0x2e   :  { %258 = vmatpush1.bf16.msra.mxu0 %v634_v14  ;;  %620 = vmatpush1.bf16.msra.mxu1 %v634_v14 }
  0x2f   :  { %259 = vmatprep.subr.bf16.mxu0 %v660_v0  ;;  %608 = vmatprep.subr.bf16.mxu1 %v660_v0 }
  0x32   :  { %260 = vmatpush1.bf16.msra.mxu0 %v233_v16  ;;  %621 = vmatpush1.bf16.msra.mxu1 %v233_v16 }
  0x35   :  { %268 = vmatmul.mubr.bf16.vlgmr.msra.gmra.mrb[0].mxu0 %v636_v17  ;;  %300 = vmatmul.mubr.bf16.vlgmr.msra.gmra.mrb[0].mxu1 %v639_v18 }
  0x36   :  { %508 = vmatprep.mubr.msk.bf16.mxu0 %vm206_vm0, %v642_v19  ;;  %512 = vmatprep.mubr.msk.bf16.mxu1 %vm206_vm0, %v644_v20 }
  0x3d   :  { %276 = vmatmul.mubr.bf16.gmra.mrb[4].mxu0 %v646_v21  ;;  %308 = vmatmul.mubr.bf16.gmra.mrb[4].mxu1 %v647_v22 }
  0x3e   :  { %509 = vmatprep.mubr.msk.bf16.mxu0 %vm206_vm0, %v648_v23  ;;  %513 = vmatprep.mubr.msk.bf16.mxu1 %vm206_vm0, %v650_v24 }
  0x45   :  { %284 = vmatmul.mubr.bf16.gmra.mrb[8].mxu0 %v652_v25  ;;  %316 = vmatmul.mubr.bf16.gmra.mrb[8].mxu1 %v653_v26 }
  0x46   :  { %510 = vmatprep.mubr.msk.bf16.mxu0 %vm206_vm0, %v654_v27  ;;  %514 = vmatprep.mubr.msk.bf16.mxu1 %vm206_vm0, %v656_v28 }
  0x4d   :  { %292 = vmatmul.mubr.bf16.gmra.mrb[12].mxu0 %v658_v29  ;;  %324 = vmatmul.mubr.bf16.gmra.mrb[12].mxu1 %v659_v30 }
 0x108   :  { %v269_v32 = vpop.f32.mrb[0].mxu0  ;;  %v301_v34 = vpop.f32.mrb[0].mxu1 }
 0x109   :  { %v339_v35 = vmul.f32 %v810_v31, %v269_v32  ;;  %v347_v36 = vmul.f32 %v810_v31, %v301_v34  ;;  %v271_v37 = vpop.f32.mrb[1].mxu0  ;;  %v303_v38 = vpop.f32.mrb[1].mxu1 }
 0x10a   :  { %v272_v39 = vpop.f32.mrb[2].mxu0  ;;  %v304_v40 = vpop.f32.mrb[2].mxu1 }
 0x10b   :  { %v362_v41 = vadd.f32 %v815_v33, %v339_v35  ;;  %v370_v42 = vadd.f32 %v815_v33, %v347_v36  ;;  %v340_v43 = vmul.f32 %v810_v31, %v272_v39  ;;  %v348_v44 = vmul.f32 %v810_v31, %v304_v40  ;;  %v274_v45 = vpop.f32.mrb[3].mxu0  ;;  %v306_v46 = vpop.f32.mrb[3].mxu1 }
 0x10d   :  { %v363_v47 = vadd.f32 %v815_v33, %v340_v43  ;;  %v371_v48 = vadd.f32 %v815_v33, %v348_v44  ;;  %v378_v49 = vmax.f32 %v362_v41, 0.0  ;;  %v386_v50 = vmax.f32 %v370_v42, 0.0 }
 0x10f   :  { %v379_v51 = vmax.f32 %v363_v47, 0.0  ;;  %v387_v52 = vmax.f32 %v371_v48, 0.0 }
 0x110   :  { %v277_v53 = vpop.f32.mrb[4].mxu0  ;;  %v309_v54 = vpop.f32.mrb[4].mxu1 }
 0x111   :  { %v552_v55 = vpack.c.bf16 %v379_v51, %v378_v49  ;;  %v572_v56 = vpack.c.bf16 %v387_v52, %v386_v50  ;;  %v341_v57 = vmul.f32 %v810_v31, %v277_v53  ;;  %v349_v58 = vmul.f32 %v810_v31, %v309_v54  ;;  %v279_v59 = vpop.f32.mrb[5].mxu0  ;;  %v311_v60 = vpop.f32.mrb[5].mxu1 }
 0x112   :  { %v280_v61 = vpop.f32.mrb[6].mxu0  ;;  %v312_v62 = vpop.f32.mrb[6].mxu1 }
 0x113   :  { %553 = vst [vmem:[%s877_s4] sm:$0xff] %v552_v55   ;;  %592 = vst [vmem:[%s877_s4 + $0x20] sm:$0xff] %v572_v56   ;;  %v364_v63 = vadd.f32 %v815_v33, %v341_v57  ;;  %v372_v0 = vadd.f32 %v815_v33, %v349_v58  ;;  %v342_v1 = vmul.f32 %v810_v31, %v280_v61  ;;  %v282_v3 = vpop.f32.mrb[7].mxu0  ;;  %v314_v4 = vpop.f32.mrb[7].mxu1 }
 0x114   :  { %v350_v2 = vmul.f32 %v810_v31, %v312_v62 }
 0x115   :  { %v365_v5 = vadd.f32 %v815_v33, %v342_v1  ;;  %v380_v7 = vmax.f32 %v364_v63, 0.0  ;;  %v388_v8 = vmax.f32 %v372_v0, 0.0 }
 0x116   :  { %v373_v6 = vadd.f32 %v815_v33, %v350_v2 }
 0x117   :  { %v381_v9 = vmax.f32 %v365_v5, 0.0 }
 0x118   :  { %v389_v10 = vmax.f32 %v373_v6, 0.0  ;;  %v285_v11 = vpop.f32.mrb[8].mxu0  ;;  %v317_v12 = vpop.f32.mrb[8].mxu1 }
 0x119   :  { %v557_v13 = vpack.c.bf16 %v381_v9, %v380_v7  ;;  %v343_v15 = vmul.f32 %v810_v31, %v285_v11  ;;  %v351_v16 = vmul.f32 %v810_v31, %v317_v12  ;;  %v287_v17 = vpop.f32.mrb[9].mxu0  ;;  %v319_v18 = vpop.f32.mrb[9].mxu1 }
 0x11a   :  { %v577_v14 = vpack.c.bf16 %v389_v10, %v388_v8  ;;  %v288_v19 = vpop.f32.mrb[10].mxu0  ;;  %v320_v20 = vpop.f32.mrb[10].mxu1 }
 0x11b   :  { %589 = vst [vmem:[%s877_s4 + $0x8] sm:$0xff] %v557_v13   ;;  %v366_v21 = vadd.f32 %v815_v33, %v343_v15  ;;  %v374_v22 = vadd.f32 %v815_v33, %v351_v16  ;;  %v344_v23 = vmul.f32 %v810_v31, %v288_v19  ;;  %v352_v24 = vmul.f32 %v810_v31, %v320_v20  ;;  %v290_v25 = vpop.f32.mrb[11].mxu0  ;;  %v322_v26 = vpop.f32.mrb[11].mxu1 }
 0x11c   :  { %593 = vst [vmem:[%s877_s4 + $0x28] sm:$0xff] %v577_v14  }
 0x11d   :  { %v367_v27 = vadd.f32 %v815_v33, %v344_v23  ;;  %v375_v28 = vadd.f32 %v815_v33, %v352_v24  ;;  %v382_v29 = vmax.f32 %v366_v21, 0.0  ;;  %v390_v30 = vmax.f32 %v374_v22, 0.0 }
 0x11f   :  { %v383_v32 = vmax.f32 %v367_v27, 0.0  ;;  %v391_v34 = vmax.f32 %v375_v28, 0.0 }
 0x120   :  { %v293_v35 = vpop.f32.mrb[12].mxu0  ;;  %v325_v36 = vpop.f32.mrb[12].mxu1 }
 0x121   :  { %v562_v37 = vpack.c.bf16 %v383_v32, %v382_v29  ;;  %v582_v38 = vpack.c.bf16 %v391_v34, %v390_v30  ;;  %v345_v39 = vmul.f32 %v810_v31, %v293_v35  ;;  %v353_v40 = vmul.f32 %v810_v31, %v325_v36  ;;  %v295_v41 = vpop.f32.mrb[13].mxu0  ;;  %v327_v42 = vpop.f32.mrb[13].mxu1 }
 0x122   :  { %v296_v43 = vpop.f32.mrb[14].mxu0  ;;  %v328_v44 = vpop.f32.mrb[14].mxu1 }
 0x123   :  { %590 = vst [vmem:[%s877_s4 + $0x10] sm:$0xff] %v562_v37   ;;  %594 = vst [vmem:[%s877_s4 + $0x30] sm:$0xff] %v582_v38   ;;  %v368_v45 = vadd.f32 %v815_v33, %v345_v39  ;;  %v376_v46 = vadd.f32 %v815_v33, %v353_v40  ;;  %v346_v47 = vmul.f32 %v810_v31, %v296_v43  ;;  %v298_v49 = vpop.f32.mrb[15].mxu0  ;;  %v330_v50 = vpop.f32.mrb[15].mxu1 }
 0x124   :  { %v354_v48 = vmul.f32 %v810_v31, %v328_v44 }
 0x125   :  { %v369_v51 = vadd.f32 %v815_v33, %v346_v47  ;;  %v384_v53 = vmax.f32 %v368_v45, 0.0  ;;  %v392_v54 = vmax.f32 %v376_v46, 0.0 }
 0x126   :  { %v377_v52 = vadd.f32 %v815_v33, %v354_v48 }
 0x127   :  { %v385_v55 = vmax.f32 %v369_v51, 0.0 }
 0x128   :  { %v393_v56 = vmax.f32 %v377_v52, 0.0 }
 0x129   :  { %v567_v57 = vpack.c.bf16 %v385_v55, %v384_v53 }
 0x12a   :  { %v587_v58 = vpack.c.bf16 %v393_v56, %v392_v54 }
 0x12b   :  { %591 = vst [vmem:[%s877_s4 + $0x18] sm:$0xff] %v567_v57  }
 0x12c   :  { %595 = vst [vmem:[%s877_s4 + $0x38] sm:$0xff] %v587_v58  }

// kernel: stem_forward.6
= control target key start
LH: loop header
LB: loop body
LE: loop exit
PB: predicated region body
PF: predicated region fallthrough
CT: control target
= control target key end

     0   :  { %v612_v0 = vmov 0   ;;  %vm178_vm0 = vcmask 130048   ;;  %s787_s1 = inlined_call_operand.vmem [shape: bf16[144,128], index: 1, kind: input, shape index: {}]   ;;  %s788_s0 = inlined_call_operand.vmem [shape: bf16[128,144], index: 0, kind: input, shape index: {}]   ;;  %s789_s2 = inlined_call_operand.vmem [shape: f32[1,128], index: 2, kind: input, shape index: {}]   ;;  %s790_s3 = inlined_call_operand.vmem [shape: f32[1,128], index: 3, kind: input, shape index: {}]   ;;  %s791_s4 = inlined_call_operand.vmem [shape: bf16[128,128], index: 4, kind: output, shape index: {}]  }
   0x1   :  { %203 = vmatprep.subr.bf16.mxu0 %v612_v0  ;;  %560 = vmatprep.subr.bf16.mxu1 %v612_v0  ;;  %v579_v1 = vld [vmem:[%s787_s1] sm:$0xff]   ;;  %v580_v2 = vld [vmem:[%s787_s1 + $0x8] sm:$0xff]   ;;  %v581_v3 = vld [vmem:[%s787_s1 + $0x10] sm:$0xff]  }
   0x2   :  { %204 = vmatpush1.bf16.msra.mxu0 %v579_v1  ;;  %569 = vmatpush1.bf16.msra.mxu1 %v579_v1  ;;  %v582_v4 = vld [vmem:[%s787_s1 + $0x18] sm:$0xff]   ;;  %v590_v5 = vld [vmem:[%s788_s0 + $0x4] ss:$8 sps:$4 sm:$0xff]   ;;  %v585_v9 = vld [vmem:[%s787_s1 + $0x30] sm:$0xff]  }
   0x3   :  { %205 = vmatprep.subr.bf16.mxu0 %v612_v0  ;;  %561 = vmatprep.subr.bf16.mxu1 %v612_v0  ;;  %v593_v6 = vld [vmem:[%s788_s0 + $0x44] ss:$8 sps:$4 sm:$0xff]   ;;  %v586_v10 = vld [vmem:[%s787_s1 + $0x38] sm:$0xff]   ;;  %v588_v12 = vld [vmem:[%s788_s0] ss:$8 sps:$4 sm:$0xff]  }
   0x4   :  { %471 = vmatprep.mubr.msk.bf16.mxu0 %vm178_vm0, %v590_v5  ;;  %475 = vmatprep.mubr.msk.bf16.mxu1 %vm178_vm0, %v593_v6  ;;  %v583_v7 = vld [vmem:[%s787_s1 + $0x20] sm:$0xff]   ;;  %v584_v8 = vld [vmem:[%s787_s1 + $0x28] sm:$0xff]   ;;  %v594_v14 = vld [vmem:[%s788_s0 + $0x14] ss:$8 sps:$4 sm:$0xff]  }
   0x5   :  { %v587_v11 = vld [vmem:[%s787_s1 + $0x40] sm:$0xff]   ;;  %v596_v15 = vld [vmem:[%s788_s0 + $0x54] ss:$8 sps:$4 sm:$0xff]   ;;  %v598_v16 = vld [vmem:[%s788_s0 + $0x10] ss:$8 sps:$4 sm:$0xff]  }
   0x6   :  { %206 = vmatpush1.bf16.msra.mxu0 %v580_v2  ;;  %570 = vmatpush1.bf16.msra.mxu1 %v580_v2  ;;  %v591_v13 = vld [vmem:[%s788_s0 + $0x40] ss:$8 sps:$4 sm:$0xff]   ;;  %v599_v17 = vld [vmem:[%s788_s0 + $0x50] ss:$8 sps:$4 sm:$0xff]   ;;  %v600_v18 = vld [vmem:[%s788_s0 + $0x24] ss:$8 sps:$4 sm:$0xff]  }
   0x7   :  { %207 = vmatprep.subr.bf16.mxu0 %v612_v0  ;;  %562 = vmatprep.subr.bf16.mxu1 %v612_v0  ;;  %v602_v19 = vld [vmem:[%s788_s0 + $0x64] ss:$8 sps:$4 sm:$0xff]   ;;  %v604_v20 = vld [vmem:[%s788_s0 + $0x20] ss:$8 sps:$4 sm:$0xff]   ;;  %v606_v22 = vld [vmem:[%s788_s0 + $0x34] ss:$8 sps:$4 sm:$0xff]  }
   0x8   :  { %v605_v21 = vld [vmem:[%s788_s0 + $0x60] ss:$8 sps:$4 sm:$0xff]   ;;  %v608_v23 = vld [vmem:[%s788_s0 + $0x74] ss:$8 sps:$4 sm:$0xff]   ;;  %v610_v24 = vld [vmem:[%s788_s0 + $0x30] ss:$8 sps:$4 sm:$0xff]  }
   0x9   :  { %v611_v25 = vld [vmem:[%s788_s0 + $0x70] ss:$8 sps:$4 sm:$0xff]   ;;  %v724_v26 = vld [vmem:[%s789_s2] ss:$0 sm:$0xff] }
   0xa   :  { %208 = vmatpush1.bf16.msra.mxu0 %v581_v3  ;;  %571 = vmatpush1.bf16.msra.mxu1 %v581_v3  ;;  %v729_v28 = vld [vmem:[%s790_s3] ss:$0 sm:$0xff] }
   0xb   :  { %209 = vmatprep.subr.bf16.mxu0 %v612_v0  ;;  %563 = vmatprep.subr.bf16.mxu1 %v612_v0 }
   0xe   :  { %210 = vmatpush1.bf16.msra.mxu0 %v582_v4  ;;  %572 = vmatpush1.bf16.msra.mxu1 %v582_v4 }
   0xf   :  { %211 = vmatprep.subr.bf16.mxu0 %v612_v0  ;;  %564 = vmatprep.subr.bf16.mxu1 %v612_v0 }
  0x12   :  { %212 = vmatpush1.bf16.msra.mxu0 %v583_v7  ;;  %573 = vmatpush1.bf16.msra.mxu1 %v583_v7 }
  0x13   :  { %213 = vmatprep.subr.bf16.mxu0 %v612_v0  ;;  %565 = vmatprep.subr.bf16.mxu1 %v612_v0 }
  0x16   :  { %214 = vmatpush1.bf16.msra.mxu0 %v584_v8  ;;  %574 = vmatpush1.bf16.msra.mxu1 %v584_v8 }
  0x17   :  { %215 = vmatprep.subr.bf16.mxu0 %v612_v0  ;;  %566 = vmatprep.subr.bf16.mxu1 %v612_v0 }
  0x1a   :  { %216 = vmatpush1.bf16.msra.mxu0 %v585_v9  ;;  %575 = vmatpush1.bf16.msra.mxu1 %v585_v9 }
  0x1b   :  { %217 = vmatprep.subr.bf16.mxu0 %v612_v0  ;;  %567 = vmatprep.subr.bf16.mxu1 %v612_v0 }
  0x1e   :  { %218 = vmatpush1.bf16.msra.mxu0 %v586_v10  ;;  %576 = vmatpush1.bf16.msra.mxu1 %v586_v10 }
  0x1f   :  { %219 = vmatprep.subr.bf16.mxu0 %v612_v0  ;;  %568 = vmatprep.subr.bf16.mxu1 %v612_v0 }
  0x22   :  { %220 = vmatpush1.bf16.msra.mxu0 %v587_v11  ;;  %577 = vmatpush1.bf16.msra.mxu1 %v587_v11 }
  0x25   :  { %236 = vmatmul.mubr.bf16.vlgmr.msra.gmra.mrb[0].mxu0 %v588_v12  ;;  %268 = vmatmul.mubr.bf16.vlgmr.msra.gmra.mrb[0].mxu1 %v591_v13 }
  0x26   :  { %472 = vmatprep.mubr.msk.bf16.mxu0 %vm178_vm0, %v594_v14  ;;  %476 = vmatprep.mubr.msk.bf16.mxu1 %vm178_vm0, %v596_v15 }
  0x2d   :  { %244 = vmatmul.mubr.bf16.gmra.mrb[4].mxu0 %v598_v16  ;;  %276 = vmatmul.mubr.bf16.gmra.mrb[4].mxu1 %v599_v17 }
  0x2e   :  { %473 = vmatprep.mubr.msk.bf16.mxu0 %vm178_vm0, %v600_v18  ;;  %477 = vmatprep.mubr.msk.bf16.mxu1 %vm178_vm0, %v602_v19 }
  0x35   :  { %252 = vmatmul.mubr.bf16.gmra.mrb[8].mxu0 %v604_v20  ;;  %284 = vmatmul.mubr.bf16.gmra.mrb[8].mxu1 %v605_v21 }
  0x36   :  { %474 = vmatprep.mubr.msk.bf16.mxu0 %vm178_vm0, %v606_v22  ;;  %478 = vmatprep.mubr.msk.bf16.mxu1 %vm178_vm0, %v608_v23 }
  0x3d   :  { %260 = vmatmul.mubr.bf16.gmra.mrb[12].mxu0 %v610_v24  ;;  %292 = vmatmul.mubr.bf16.gmra.mrb[12].mxu1 %v611_v25 }
  0xf8   :  { %v237_v27 = vpop.f32.mrb[0].mxu0  ;;  %v269_v29 = vpop.f32.mrb[0].mxu1 }
  0xf9   :  { %v307_v30 = vmul.f32 %v724_v26, %v237_v27  ;;  %v315_v31 = vmul.f32 %v724_v26, %v269_v29  ;;  %v239_v32 = vpop.f32.mrb[1].mxu0  ;;  %v271_v33 = vpop.f32.mrb[1].mxu1 }
  0xfa   :  { %v240_v34 = vpop.f32.mrb[2].mxu0  ;;  %v272_v35 = vpop.f32.mrb[2].mxu1 }
  0xfb   :  { %v330_v36 = vadd.f32 %v729_v28, %v307_v30  ;;  %v338_v37 = vadd.f32 %v729_v28, %v315_v31  ;;  %v308_v38 = vmul.f32 %v724_v26, %v240_v34  ;;  %v316_v39 = vmul.f32 %v724_v26, %v272_v35  ;;  %v242_v40 = vpop.f32.mrb[3].mxu0  ;;  %v274_v41 = vpop.f32.mrb[3].mxu1 }
  0xfd   :  { %v331_v42 = vadd.f32 %v729_v28, %v308_v38  ;;  %v339_v43 = vadd.f32 %v729_v28, %v316_v39  ;;  %v346_v44 = vmax.f32 %v330_v36, 0.0  ;;  %v354_v45 = vmax.f32 %v338_v37, 0.0 }
  0xff   :  { %v347_v46 = vmax.f32 %v331_v42, 0.0  ;;  %v355_v47 = vmax.f32 %v339_v43, 0.0 }
 0x100   :  { %v245_v48 = vpop.f32.mrb[4].mxu0  ;;  %v277_v49 = vpop.f32.mrb[4].mxu1 }
 0x101   :  { %v516_v50 = vpack.c.bf16 %v347_v46, %v346_v44  ;;  %v536_v51 = vpack.c.bf16 %v355_v47, %v354_v45  ;;  %v309_v52 = vmul.f32 %v724_v26, %v245_v48  ;;  %v317_v53 = vmul.f32 %v724_v26, %v277_v49  ;;  %v247_v54 = vpop.f32.mrb[5].mxu0  ;;  %v279_v55 = vpop.f32.mrb[5].mxu1 }
 0x102   :  { %v248_v56 = vpop.f32.mrb[6].mxu0  ;;  %v280_v57 = vpop.f32.mrb[6].mxu1 }
 0x103   :  { %517 = vst [vmem:[%s791_s4] sm:$0xff] %v516_v50   ;;  %556 = vst [vmem:[%s791_s4 + $0x20] sm:$0xff] %v536_v51   ;;  %v332_v58 = vadd.f32 %v729_v28, %v309_v52  ;;  %v340_v59 = vadd.f32 %v729_v28, %v317_v53  ;;  %v310_v60 = vmul.f32 %v724_v26, %v248_v56  ;;  %v250_v62 = vpop.f32.mrb[7].mxu0  ;;  %v282_v63 = vpop.f32.mrb[7].mxu1 }
 0x104   :  { %v318_v61 = vmul.f32 %v724_v26, %v280_v57 }
 0x105   :  { %v333_v0 = vadd.f32 %v729_v28, %v310_v60  ;;  %v348_v2 = vmax.f32 %v332_v58, 0.0  ;;  %v356_v3 = vmax.f32 %v340_v59, 0.0 }
 0x106   :  { %v341_v1 = vadd.f32 %v729_v28, %v318_v61 }
 0x107   :  { %v349_v4 = vmax.f32 %v333_v0, 0.0 }
 0x108   :  { %v357_v5 = vmax.f32 %v341_v1, 0.0  ;;  %v253_v6 = vpop.f32.mrb[8].mxu0  ;;  %v285_v7 = vpop.f32.mrb[8].mxu1 }
 0x109   :  { %v521_v8 = vpack.c.bf16 %v349_v4, %v348_v2  ;;  %v311_v10 = vmul.f32 %v724_v26, %v253_v6  ;;  %v319_v11 = vmul.f32 %v724_v26, %v285_v7  ;;  %v255_v12 = vpop.f32.mrb[9].mxu0  ;;  %v287_v13 = vpop.f32.mrb[9].mxu1 }
 0x10a   :  { %v541_v9 = vpack.c.bf16 %v357_v5, %v356_v3  ;;  %v256_v14 = vpop.f32.mrb[10].mxu0  ;;  %v288_v15 = vpop.f32.mrb[10].mxu1 }
 0x10b   :  { %553 = vst [vmem:[%s791_s4 + $0x8] sm:$0xff] %v521_v8   ;;  %v334_v16 = vadd.f32 %v729_v28, %v311_v10  ;;  %v342_v17 = vadd.f32 %v729_v28, %v319_v11  ;;  %v312_v18 = vmul.f32 %v724_v26, %v256_v14  ;;  %v320_v19 = vmul.f32 %v724_v26, %v288_v15  ;;  %v258_v20 = vpop.f32.mrb[11].mxu0  ;;  %v290_v21 = vpop.f32.mrb[11].mxu1 }
 0x10c   :  { %557 = vst [vmem:[%s791_s4 + $0x28] sm:$0xff] %v541_v9  }
 0x10d   :  { %v335_v22 = vadd.f32 %v729_v28, %v312_v18  ;;  %v343_v23 = vadd.f32 %v729_v28, %v320_v19  ;;  %v350_v24 = vmax.f32 %v334_v16, 0.0  ;;  %v358_v25 = vmax.f32 %v342_v17, 0.0 }
 0x10f   :  { %v351_v27 = vmax.f32 %v335_v22, 0.0  ;;  %v359_v29 = vmax.f32 %v343_v23, 0.0 }
 0x110   :  { %v261_v30 = vpop.f32.mrb[12].mxu0  ;;  %v293_v31 = vpop.f32.mrb[12].mxu1 }
 0x111   :  { %v526_v32 = vpack.c.bf16 %v351_v27, %v350_v24  ;;  %v546_v33 = vpack.c.bf16 %v359_v29, %v358_v25  ;;  %v313_v34 = vmul.f32 %v724_v26, %v261_v30  ;;  %v321_v35 = vmul.f32 %v724_v26, %v293_v31  ;;  %v263_v36 = vpop.f32.mrb[13].mxu0  ;;  %v295_v37 = vpop.f32.mrb[13].mxu1 }
 0x112   :  { %v264_v38 = vpop.f32.mrb[14].mxu0  ;;  %v296_v39 = vpop.f32.mrb[14].mxu1 }
 0x113   :  { %554 = vst [vmem:[%s791_s4 + $0x10] sm:$0xff] %v526_v32   ;;  %558 = vst [vmem:[%s791_s4 + $0x30] sm:$0xff] %v546_v33   ;;  %v336_v40 = vadd.f32 %v729_v28, %v313_v34  ;;  %v344_v41 = vadd.f32 %v729_v28, %v321_v35  ;;  %v314_v42 = vmul.f32 %v724_v26, %v264_v38  ;;  %v266_v44 = vpop.f32.mrb[15].mxu0  ;;  %v298_v45 = vpop.f32.mrb[15].mxu1 }
 0x114   :  { %v322_v43 = vmul.f32 %v724_v26, %v296_v39 }
 0x115   :  { %v337_v46 = vadd.f32 %v729_v28, %v314_v42  ;;  %v352_v48 = vmax.f32 %v336_v40, 0.0  ;;  %v360_v49 = vmax.f32 %v344_v41, 0.0 }
 0x116   :  { %v345_v47 = vadd.f32 %v729_v28, %v322_v43 }
 0x117   :  { %v353_v50 = vmax.f32 %v337_v46, 0.0 }
 0x118   :  { %v361_v51 = vmax.f32 %v345_v47, 0.0 }
 0x119   :  { %v531_v52 = vpack.c.bf16 %v353_v50, %v352_v48 }
 0x11a   :  { %v551_v53 = vpack.c.bf16 %v361_v51, %v360_v49 }
 0x11b   :  { %555 = vst [vmem:[%s791_s4 + $0x18] sm:$0xff] %v531_v52  }
 0x11c   :  { %559 = vst [vmem:[%s791_s4 + $0x38] sm:$0xff] %v551_v53  }

// kernel: stem_forward.8
= control target key start
LH: loop header
LB: loop body
LE: loop exit
PB: predicated region body
PF: predicated region fallthrough
CT: control target
= control target key end

     0   :  { %v249_v0 = vmov 0   ;;  %vm112_vm0 = vcmask 130048   ;;  %s332_s1 = inlined_call_operand.vmem [shape: bf16[144,128], index: 1, kind: input, shape index: {}]   ;;  %s333_s0 = inlined_call_operand.vmem [shape: bf16[32,144], index: 0, kind: input, shape index: {}]   ;;  %s334_s2 = inlined_call_operand.vmem [shape: f32[1,128], index: 2, kind: input, shape index: {}]   ;;  %s335_s3 = inlined_call_operand.vmem [shape: f32[1,128], index: 3, kind: input, shape index: {}]   ;;  %s336_s4 = inlined_call_operand.vmem [shape: f32[32,128], index: 4, kind: output, shape index: {}]  }
   0x1   :  { %119 = vmatprep.subr.bf16.mxu0 %v249_v0  ;;  %215 = vmatprep.subr.bf16.mxu1 %v249_v0  ;;  %v234_v1 = vld [vmem:[%s332_s1] sm:$0xff]   ;;  %v235_v2 = vld [vmem:[%s332_s1 + $0x8] sm:$0xff]   ;;  %v236_v3 = vld [vmem:[%s332_s1 + $0x10] sm:$0xff]  }
   0x2   :  { %120 = vmatpush1.bf16.msra.mxu0 %v234_v1  ;;  %224 = vmatpush1.bf16.msra.mxu1 %v234_v1  ;;  %v237_v4 = vld [vmem:[%s332_s1 + $0x18] sm:$0xff]   ;;  %v245_v5 = vld [vmem:[%s333_s0 + $0x4] ss:$8 sps:$4 sm:$0xff]   ;;  %v240_v9 = vld [vmem:[%s332_s1 + $0x30] sm:$0xff]  }
   0x3   :  { %121 = vmatprep.subr.bf16.mxu0 %v249_v0  ;;  %216 = vmatprep.subr.bf16.mxu1 %v249_v0  ;;  %v248_v6 = vld [vmem:[%s333_s0 + $0x14] ss:$8 sps:$4 sm:$0xff]   ;;  %v238_v7 = vld [vmem:[%s332_s1 + $0x20] sm:$0xff]   ;;  %v239_v8 = vld [vmem:[%s332_s1 + $0x28] sm:$0xff]  }
   0x4   :  { %211 = vmatprep.mubr.msk.bf16.mxu0 %vm112_vm0, %v245_v5  ;;  %212 = vmatprep.mubr.msk.bf16.mxu1 %vm112_vm0, %v248_v6  ;;  %v241_v10 = vld [vmem:[%s332_s1 + $0x38] sm:$0xff]   ;;  %v242_v11 = vld [vmem:[%s332_s1 + $0x40] sm:$0xff]  }
   0x5   :  { %v243_v12 = vld [vmem:[%s333_s0] ss:$8 sps:$4 sm:$0xff]   ;;  %v246_v13 = vld [vmem:[%s333_s0 + $0x10] ss:$8 sps:$4 sm:$0xff]  }
   0x6   :  { %122 = vmatpush1.bf16.msra.mxu0 %v235_v2  ;;  %225 = vmatpush1.bf16.msra.mxu1 %v235_v2  ;;  %v213_v14 = vld [vmem:[%s334_s2] ss:$0 sm:$0xff] }
   0x7   :  { %123 = vmatprep.subr.bf16.mxu0 %v249_v0  ;;  %217 = vmatprep.subr.bf16.mxu1 %v249_v0  ;;  %v214_v16 = vld [vmem:[%s335_s3] ss:$0 sm:$0xff] }
   0xa   :  { %124 = vmatpush1.bf16.msra.mxu0 %v236_v3  ;;  %226 = vmatpush1.bf16.msra.mxu1 %v236_v3 }
   0xb   :  { %125 = vmatprep.subr.bf16.mxu0 %v249_v0  ;;  %218 = vmatprep.subr.bf16.mxu1 %v249_v0 }
   0xe   :  { %126 = vmatpush1.bf16.msra.mxu0 %v237_v4  ;;  %227 = vmatpush1.bf16.msra.mxu1 %v237_v4 }
   0xf   :  { %127 = vmatprep.subr.bf16.mxu0 %v249_v0  ;;  %219 = vmatprep.subr.bf16.mxu1 %v249_v0 }
  0x12   :  { %128 = vmatpush1.bf16.msra.mxu0 %v238_v7  ;;  %228 = vmatpush1.bf16.msra.mxu1 %v238_v7 }
  0x13   :  { %129 = vmatprep.subr.bf16.mxu0 %v249_v0  ;;  %220 = vmatprep.subr.bf16.mxu1 %v249_v0 }
  0x16   :  { %130 = vmatpush1.bf16.msra.mxu0 %v239_v8  ;;  %229 = vmatpush1.bf16.msra.mxu1 %v239_v8 }
  0x17   :  { %131 = vmatprep.subr.bf16.mxu0 %v249_v0  ;;  %221 = vmatprep.subr.bf16.mxu1 %v249_v0 }
  0x1a   :  { %132 = vmatpush1.bf16.msra.mxu0 %v240_v9  ;;  %230 = vmatpush1.bf16.msra.mxu1 %v240_v9 }
  0x1b   :  { %133 = vmatprep.subr.bf16.mxu0 %v249_v0  ;;  %222 = vmatprep.subr.bf16.mxu1 %v249_v0 }
  0x1e   :  { %134 = vmatpush1.bf16.msra.mxu0 %v241_v10  ;;  %231 = vmatpush1.bf16.msra.mxu1 %v241_v10 }
  0x1f   :  { %135 = vmatprep.subr.bf16.mxu0 %v249_v0  ;;  %223 = vmatprep.subr.bf16.mxu1 %v249_v0 }
  0x22   :  { %136 = vmatpush1.bf16.msra.mxu0 %v242_v11  ;;  %232 = vmatpush1.bf16.msra.mxu1 %v242_v11 }
  0x25   :  { %152 = vmatmul.mubr.bf16.vlgmr.msra.gmra.mrb[0].mxu0 %v243_v12  ;;  %160 = vmatmul.mubr.bf16.vlgmr.msra.gmra.mrb[0].mxu1 %v246_v13 }
  0xf8   :  { %v153_v15 = vpop.f32.mrb[0].mxu0  ;;  %v161_v17 = vpop.f32.mrb[0].mxu1 }
  0xf9   :  { %v175_v18 = vmul.f32 %v213_v14, %v153_v15  ;;  %v177_v19 = vmul.f32 %v213_v14, %v161_v17  ;;  %v155_v20 = vpop.f32.mrb[1].mxu0  ;;  %v163_v21 = vpop.f32.mrb[1].mxu1 }
  0xfa   :  { %v156_v22 = vpop.f32.mrb[2].mxu0  ;;  %v164_v23 = vpop.f32.mrb[2].mxu1 }
  0xfb   :  { %v186_v24 = vadd.f32 %v214_v16, %v175_v18  ;;  %v188_v25 = vadd.f32 %v214_v16, %v177_v19  ;;  %v176_v26 = vmul.f32 %v213_v14, %v156_v22  ;;  %v178_v27 = vmul.f32 %v213_v14, %v164_v23  ;;  %v158_v28 = vpop.f32.mrb[3].mxu0  ;;  %v166_v29 = vpop.f32.mrb[3].mxu1 }
  0xfd   :  { %190 = vst [vmem:[%s336_s4] sm:$0xff] %v186_v24  ;;  %192 = vst [vmem:[%s336_s4 + $0x10] sm:$0xff] %v188_v25  ;;  %v187_v30 = vadd.f32 %v214_v16, %v176_v26  ;;  %v189_v31 = vadd.f32 %v214_v16, %v178_v27 }
  0xff   :  { %191 = vst [vmem:[%s336_s4 + $0x8] sm:$0xff] %v187_v30  ;;  %193 = vst [vmem:[%s336_s4 + $0x18] sm:$0xff] %v189_v31 }

// kernel: stem_forward.9
= control target key start
LH: loop header
LB: loop body
LE: loop exit
PB: predicated region body
PF: predicated region fallthrough
CT: control target
= control target key end

     0   :  { %v19_v0 = vlaneseq  ;;  %s216_s0 = inlined_call_operand.vmem [shape: f32[32,128], index: 0, kind: input, shape index: {}]   ;;  %s217_s1 = inlined_call_operand.vmem [shape: f32[1,128], index: 1, kind: input, shape index: {}]   ;;  %s218_s2 = inlined_call_operand.vmem [shape: f32[1,128], index: 2, kind: input, shape index: {}]   ;;  %s219_s3 = inlined_call_operand.hbm [shape: f32[32,128], index: 3, kind: output, shape index: {}]  }
   0x1   :  { %8 = vsyncpa [#allocation3], 0  ;;  %v15_v1 = vld [vmem:[%s216_s0] sm:$0xff]  ;;  %v17_v3 = vld [vmem:[%s216_s0 + $0x10] sm:$0xff]  ;;  %s155_s23 = smov [#allocation2]  }
   0x2   :  { %v20_v2 = vand.u32 127, %v19_v0  ;;  %v16_v4 = vld [vmem:[%s216_s0 + $0x8] sm:$0xff]  ;;  %v18_v5 = vld [vmem:[%s216_s0 + $0x18] sm:$0xff]  ;;  %v118_v43 = vld [vmem:[%s217_s1] ss:$0 sm:$0xff]  ;;  %s107_s1 = sshll.u32 %s155_s23, 4  ;;  %s108_s1 = int_to_ptr.vmem [resolvable:$true] %s107_s1 }
   0x3   :  { %v119_v45 = vld [vmem:[%s218_s2] ss:$0 sm:$0xff]  ;;  %s131_s2 = scalar_lea.vmem %s108_s1, 512  ;;  %p136_p1 = scmp.lt.s32.totalorder %s108_s1, %s108_s1 }
   0x4   :  { %vm21_vm0 = vcmp.lt.s32.totalorder %v20_v2, 32  ;;  %p132_p0 = scmp.ne.s32.totalorder %s108_s1, %s131_s2  ;;  %p137_p2 = scmp.lt.s32.totalorder %s131_s2, %s131_s2 }
   0x5   :  { %v24_v6 = vsel %vm21_vm0, %v15_v1, 0.0  ;;  %v26_v7 = vsel %vm21_vm0, %v17_v3, 0.0  ;;  %v25_v8 = vsel %vm21_vm0, %v16_v4, 0.0  ;;  %v27_v9 = vsel %vm21_vm0, %v18_v5, 0.0 }
   0x6   :  { %28 = vadd.xlane.f32.xlu0 %v24_v6  ;;  %32 = vadd.xlane.f32.xlu1 %v26_v7  ;;  %p138_p3 = por %p137_p2, %p136_p1 }
   0x8   :  { %p139_p4 = pnand %p138_p3, %p132_p0 }
   0xa   :  { %30 = vadd.xlane.f32.xlu0 %v25_v8  ;;  %34 = vadd.xlane.f32.xlu1 %v27_v9 }
  0x93   :  { %v29_v10 = vpop.xlane.xlu0 %28  ;;  %v33_v11 = vpop.xlane.xlu1 %32 }
  0x94   :  { %v36_v12 = vmul.f32 0.03125, %v29_v10  ;;  %v38_v13 = vmul.f32 0.03125, %v33_v11 }
  0x96   :  { %v40_v14 = vsub.f32 %v15_v1, %v36_v12  ;;  %v42_v15 = vsub.f32 %v17_v3, %v38_v13 }
  0x97   :  { %v31_v16 = vpop.xlane.xlu0 %30  ;;  %v35_v17 = vpop.xlane.xlu1 %34 }
  0x98   :  { %v37_v18 = vmul.f32 0.03125, %v31_v16  ;;  %v39_v19 = vmul.f32 0.03125, %v35_v17  ;;  %v44_v20 = vmul.f32 %v40_v14, %v40_v14  ;;  %v46_v21 = vmul.f32 %v42_v15, %v42_v15 }
  0x9a   :  { %v41_v22 = vsub.f32 %v16_v4, %v37_v18  ;;  %v43_v23 = vsub.f32 %v18_v5, %v39_v19  ;;  %v48_v24 = vsel %vm21_vm0, %v44_v20, 0.0  ;;  %v50_v25 = vsel %vm21_vm0, %v46_v21, 0.0 }
  0x9b   :  { %52 = vadd.xlane.f32.xlu0 %v48_v24 }
  0x9c   :  { %v45_v26 = vmul.f32 %v41_v22, %v41_v22  ;;  %v47_v27 = vmul.f32 %v43_v23, %v43_v23 }
  0x9e   :  { %v49_v28 = vsel %vm21_vm0, %v45_v26, 0.0  ;;  %v51_v29 = vsel %vm21_vm0, %v47_v27, 0.0 }
  0x9f   :  { %56 = vadd.xlane.f32.xlu0 %v50_v25  ;;  %54 = vadd.xlane.f32.xlu1 %v49_v28 }
  0xa3   :  { %58 = vadd.xlane.f32.xlu1 %v51_v29 }
 0x128   :  { %v53_v30 = vpop.xlane.xlu0 %52 }
 0x129   :  { %v60_v31 = vmul.f32 0.03125, %v53_v30 }
 0x12b   :  { %v64_v32 = vadd.f32 1e-05, %v60_v31 }
 0x12c   :  { %v55_v33 = vpop.xlane.xlu1 %54  ;;  %v57_v34 = vpop.xlane.xlu0 %56 }
 0x12d   :  { %123 = vrsqrt.f32 %v64_v32  ;;  %v61_v35 = vmul.f32 0.03125, %v55_v33  ;;  %v62_v36 = vmul.f32 0.03125, %v57_v34 }
 0x12f   :  { %v65_v37 = vadd.f32 1e-05, %v61_v35  ;;  %v66_v38 = vadd.f32 1e-05, %v62_v36 }
 0x130   :  { %v59_v39 = vpop.xlane.xlu1 %58 }
 0x131   :  { %125 = vrsqrt.f32 %v65_v37  ;;  %v63_v40 = vmul.f32 0.03125, %v59_v39 }
 0x132   :  { %127 = vrsqrt.f32 %v66_v38 }
 0x133   :  { %v67_v41 = vadd.f32 1e-05, %v63_v40 }
 0x135   :  { %129 = vrsqrt.f32 %v67_v41 }
 0x137   :  { %v124_v42 = vpop.eup %123 }
 0x138   :  { %v72_v44 = vmul.f32 %v124_v42, %v40_v14 }
 0x13a   :  { %v83_v46 = vmul.f32 %v118_v43, %v72_v44 }
 0x13b   :  { %v126_v47 = vpop.eup %125 }
 0x13c   :  { %v128_v48 = vpop.eup %127  ;;  %v73_v49 = vmul.f32 %v126_v47, %v41_v22  ;;  %v94_v50 = vadd.f32 %v119_v45, %v83_v46 }
 0x13d   :  { %v74_v51 = vmul.f32 %v128_v48, %v42_v15 }
 0x13e   :  { %v84_v52 = vmul.f32 %v118_v43, %v73_v49  ;;  %98 = vst [vmem:[#allocation2] sm:$0xff] %v94_v50 }
 0x13f   :  { %v130_v53 = vpop.eup %129  ;;  %v85_v54 = vmul.f32 %v118_v43, %v74_v51 }
 0x140   :  { %v75_v55 = vmul.f32 %v130_v53, %v43_v23  ;;  %v95_v56 = vadd.f32 %v119_v45, %v84_v52 }
 0x141   :  { %v96_v57 = vadd.f32 %v119_v45, %v85_v54 }
 0x142   :  { %v86_v58 = vmul.f32 %v118_v43, %v75_v55  ;;  %99 = vst [vmem:[#allocation2 + $0x8] sm:$0xff] %v95_v56 }
 0x143   :  { %100 = vst [vmem:[#allocation2 + $0x10] sm:$0xff] %v96_v57 }
 0x144   :  { %v97_v59 = vadd.f32 %v119_v45, %v86_v58 }
 0x146   :  { %101 = vst [vmem:[#allocation2 + $0x18] sm:$0xff] %v97_v59 }
 0x147   :  { %142 = shalt.err (!%p139_p4)
}
 0x148   :  { %s143_s26 = scalar_lea.hbm %s219_s3, 512 }
 0x149   :  { %p144_p5 = scmp.ne.s32.totalorder %s219_s3, %s143_s26  ;;  %p147_p6 = scmp.lt.u32.totalorder %s143_s26, %s219_s3 }
 0x14b   :  { %p149_p7 = pnand %p147_p6, %p144_p5 }
 0x14d   :  { %152 = shalt.err (!%p149_p7)
}
 0x14e   :  { %s156_s4 = smov 128   ;;  %s157_s5 = smov 8  }
 0x14f   :  { %113 = dma.vmem_to_hbm [thread:$0]  %s108_s1, 512, %s219_s3, [#allocation3], %s156_s4, %s156_s4, %s157_s5  }
 0x150   :  { %153 = dma.done.wait [#allocation3], 512  }
 0x151   :  { %154 = vsyncadd [#allocation3], 4294966784 }
 0x152   :  { %117 = vsyncpa [#allocation3], 1 }

</bundles_post_ra>
